<compile_context>
chip_gen: v7x
topology: tpu7x:2x2x1
jax: 0.10.0
libtpu: 0.0.40
codegen_flags: <defaults>
</compile_context>

<pallas_src>
import jax
import jax.numpy as jnp
from jax.experimental import pallas as pl
from jax.experimental.pallas import tpu as pltpu


def _round_up(x, m):
    return ((x + m - 1) // m) * m


def _semisuper_kernel(x_ref, w1_ref, b1_ref, w2_ref, b2_ref, w3_ref, b3_ref, o_ref):
    # One batch tile per grid step. Weights/biases are read whole once per step
    # (constant index_map keeps them resident in VMEM across the grid).
    x = x_ref[...]                                                    # (TB, F) bf16

    # Layer 1: Linear(F -> F//2) + ReLU. bf16 MXU matmul, f32 accumulate.
    h1 = jnp.dot(x, w1_ref[...], preferred_element_type=jnp.float32) + b1_ref[...]
    h1 = jnp.maximum(h1, 0.0).astype(w2_ref.dtype)

    # Layer 2: Linear(F//2 -> F//4) + ReLU.
    h2 = jnp.dot(h1, w2_ref[...], preferred_element_type=jnp.float32) + b2_ref[...]
    h2 = jnp.maximum(h2, 0.0).astype(w3_ref.dtype)

    # Layer 3: Linear(F//4 -> OUT_PAD) -- output padded to 128 lanes (lane-dense
    # store); the wrapper slices back to point_size.
    out = jnp.dot(h2, w3_ref[...], preferred_element_type=jnp.float32) + b3_ref[...]
    o_ref[...] = out.astype(o_ref.dtype)


def semisuper_forward(x, params, *, compute_dtype=jnp.bfloat16, max_batch_tile=512):
    """Fused MLP forward. x: (B, n_features) float32. Returns (B, point_size) f32."""
    w1, b1, w2, b2, w3, b3 = params
    B, F = x.shape
    d1, d2 = w1.shape[1], w2.shape[1]
    point_size = w3.shape[1]

    # ---- tiling decisions ---------------------------------------------------
    # Large batches: 512-row tiles (multiple of 256 for v6e/v7x MXU, of 128 for
    # v5e). Small batches: pad to a multiple of 16 rows (bf16 sublane packing).
    if B >= max_batch_tile:
        TB = max_batch_tile
    else:
        TB = _round_up(B, 16)
    B_pad = _round_up(B, TB)
    grid = (B_pad // TB,)

    # Lane-dense output slab.
    OUT_PAD = _round_up(point_size, 128)

    # ---- dtype / padding at the wrapper boundary ----------------------------
    cd = compute_dtype
    xp = jnp.pad(x, ((0, B_pad - B), (0, 0))).astype(cd)
    w1c = w1.astype(cd)
    w2c = w2.astype(cd)
    w3c = jnp.pad(w3, ((0, 0), (0, OUT_PAD - point_size))).astype(cd)
    b1c = b1.astype(jnp.float32)
    b2c = b2.astype(jnp.float32)
    b3c = jnp.pad(b3, ((0, 0), (0, OUT_PAD - point_size))).astype(jnp.float32)

    # Constant index_map => block never changes => weights stay VMEM-resident.
    const = lambda a: pl.BlockSpec(a.shape, lambda i: (0,) * a.ndim)

    # Rough VMEM budget (double-buffered x/out tiles + resident weights +
    # f32 intermediates). Clamped to fit the v7x 64 MiB-per-TC VMEM.
    wbytes = jnp.dtype(cd).itemsize
    est = (
        2 * TB * F * wbytes                       # x tile (double-buffered)
        + 2 * TB * OUT_PAD * 4                    # out tile (double-buffered, f32)
        + (F * d1 + d1 * d2 + d2 * OUT_PAD) * wbytes
        + (d1 + d2 + OUT_PAD) * 4                 # biases
        + TB * (d1 + d2) * 4                      # h1 / h2 temporaries
    )
    vmem_limit = int(min(64 * 2**20, max(32 * 2**20, 2 * est)))

    out_padded = pl.pallas_call(
        _semisuper_kernel,
        out_shape=jax.ShapeDtypeStruct((B_pad, OUT_PAD), jnp.float32),
        grid_spec=pltpu.PrefetchScalarGridSpec(
            num_scalar_prefetch=0,
            grid=grid,
            in_specs=[
                pl.BlockSpec((TB, F), lambda i: (i, 0)),   # x: streamed by batch tile
                const(w1c), const(b1c),
                const(w2c), const(b2c),
                const(w3c), const(b3c),
            ],
            out_specs=pl.BlockSpec((TB, OUT_PAD), lambda i: (i, 0)),
        ),
        compiler_params=pltpu.CompilerParams(
            dimension_semantics=("parallel",),   # megacore sharding on v7x
            vmem_limit_bytes=vmem_limit,
        ),
    )(xp, w1c, b1c, w2c, b2c, w3c, b3c)

    return out_padded[:B, :point_size]


def init_params(key, n_features, point_size):
    """Deterministic init matching the PyTorch module's layer shapes.
    nn.Linear stores W as (out, in); we store the transposed (in, out)."""
    dims = [
        (n_features, n_features // 2),
        (n_features // 2, n_features // 4),
        (n_features // 4, point_size),
    ]
    params = []
    for fan_in, fan_out in dims:
        key, kw, kb = jax.random.split(key, 3)
        bound = 1.0 / jnp.sqrt(fan_in)  # PyTorch default uniform bound
        w = jax.random.uniform(kw, (fan_in, fan_out), jnp.float32, -bound, bound)
        b = jax.random.uniform(kb, (1, fan_out), jnp.float32, -bound, bound)
        params += [w, b]
    return tuple(params)


def semisuper_ref(x, params, compute_dtype=jnp.bfloat16):
    """Plain-JAX reference mirroring the kernel's bf16-compute / f32-accumulate path."""
    w1, b1, w2, b2, w3, b3 = params
    cd = compute_dtype
    h1 = jnp.dot(x.astype(cd), w1.astype(cd), preferred_element_type=jnp.float32) + b1
    h1 = jnp.maximum(h1, 0.0)
    h2 = jnp.dot(h1.astype(cd), w2.astype(cd), preferred_element_type=jnp.float32) + b2
    h2 = jnp.maximum(h2, 0.0)
    return jnp.dot(h2.astype(cd), w3.astype(cd), preferred_element_type=jnp.float32) + b3


if __name__ == "__main__":
    n_features = 32
    point_size = 8
    batch = 8

    key = jax.random.PRNGKey(0)
    key, kx = jax.random.split(key)
    x = jax.random.normal(kx, (batch, n_features), jnp.float32)
    params = init_params(key, n_features, point_size)

    out = semisuper_forward(x, params)
    out = jax.block_until_ready(out)

    ref = semisuper_ref(x, params)
    assert out.shape == (batch, point_size)
    assert jnp.allclose(out, ref, atol=2e-3, rtol=2e-3), "mismatch vs reference"

    print("KERNEL_OK")
</pallas_src>

<mosaic_0001>
module attributes {stable_mosaic.version = 11 : i64} {
  func.func @_semisuper_kernel(%arg0: i32, %arg1: memref<16x32xbf16, #tpu.memory_space<vmem>>, %arg2: memref<32x16xbf16, #tpu.memory_space<vmem>>, %arg3: memref<1x16xf32, #tpu.memory_space<vmem>>, %arg4: memref<16x8xbf16, #tpu.memory_space<vmem>>, %arg5: memref<1x8xf32, #tpu.memory_space<vmem>>, %arg6: memref<8x128xbf16, #tpu.memory_space<vmem>>, %arg7: memref<1x128xf32, #tpu.memory_space<vmem>>, %arg8: memref<16x128xf32, #tpu.memory_space<vmem>>) attributes {dimension_semantics = [#tpu.dimension_semantics<parallel>], iteration_bounds = array<i64: 1>, scalar_prefetch = 0 : i64, scratch_operands = 0 : i64, tpu.core_type = #tpu.core_type<tc>, window_params = [{transform_indices = @transform_0, window_bounds = array<i64: 16, 32>}, {pipeline_mode = #tpu.pipeline_mode<synchronous>, transform_indices = @transform_1, window_bounds = array<i64: 32, 16>}, {pipeline_mode = #tpu.pipeline_mode<synchronous>, transform_indices = @transform_2, window_bounds = array<i64: 1, 16>}, {pipeline_mode = #tpu.pipeline_mode<synchronous>, transform_indices = @transform_3, window_bounds = array<i64: 16, 8>}, {pipeline_mode = #tpu.pipeline_mode<synchronous>, transform_indices = @transform_4, window_bounds = array<i64: 1, 8>}, {pipeline_mode = #tpu.pipeline_mode<synchronous>, transform_indices = @transform_5, window_bounds = array<i64: 8, 128>}, {pipeline_mode = #tpu.pipeline_mode<synchronous>, transform_indices = @transform_6, window_bounds = array<i64: 1, 128>}, {transform_indices = @transform_7, window_bounds = array<i64: 16, 128>}]} {
    %c0 = arith.constant 0 : index
    %c0_0 = arith.constant 0 : index
    %0 = vector.load %arg1[%c0, %c0_0] : memref<16x32xbf16, #tpu.memory_space<vmem>>, vector<16x32xbf16>
    %c0_1 = arith.constant 0 : index
    %c0_2 = arith.constant 0 : index
    %1 = vector.load %arg2[%c0_1, %c0_2] : memref<32x16xbf16, #tpu.memory_space<vmem>>, vector<32x16xbf16>
    %cst = arith.constant dense<0.000000e+00> : vector<16x16xf32>
    %2 = tpu.matmul %0, %1, %cst {dimension_numbers = #tpu.dot_dimension_numbers<[1], [0], [0], [1], [0, 0, 1, 1], [], []>} : vector<16x32xbf16>, vector<32x16xbf16>, vector<16x16xf32> -> vector<16x16xf32>
    %c0_3 = arith.constant 0 : index
    %c0_4 = arith.constant 0 : index
    %3 = vector.load %arg3[%c0_3, %c0_4] : memref<1x16xf32, #tpu.memory_space<vmem>>, vector<1x16xf32>
    %4 = vector.broadcast %3 : vector<1x16xf32> to vector<16x16xf32>
    %5 = arith.addf %2, %4 : vector<16x16xf32>
    %cst_5 = arith.constant 0.000000e+00 : f32
    %6 = vector.broadcast %cst_5 : f32 to vector<16x16xf32>
    %7 = arith.maximumf %5, %6 : vector<16x16xf32>
    %8 = arith.truncf %7 : vector<16x16xf32> to vector<16x16xbf16>
    %c0_6 = arith.constant 0 : index
    %c0_7 = arith.constant 0 : index
    %9 = vector.load %arg4[%c0_6, %c0_7] : memref<16x8xbf16, #tpu.memory_space<vmem>>, vector<16x8xbf16>
    %cst_8 = arith.constant dense<0.000000e+00> : vector<16x8xf32>
    %10 = tpu.matmul %8, %9, %cst_8 {dimension_numbers = #tpu.dot_dimension_numbers<[1], [0], [0], [1], [0, 0, 1, 1], [], []>} : vector<16x16xbf16>, vector<16x8xbf16>, vector<16x8xf32> -> vector<16x8xf32>
    %c0_9 = arith.constant 0 : index
    %c0_10 = arith.constant 0 : index
    %11 = vector.load %arg5[%c0_9, %c0_10] : memref<1x8xf32, #tpu.memory_space<vmem>>, vector<1x8xf32>
    %12 = vector.broadcast %11 : vector<1x8xf32> to vector<16x8xf32>
    %13 = arith.addf %10, %12 : vector<16x8xf32>
    %cst_11 = arith.constant 0.000000e+00 : f32
    %14 = vector.broadcast %cst_11 : f32 to vector<16x8xf32>
    %15 = arith.maximumf %13, %14 : vector<16x8xf32>
    %16 = arith.truncf %15 : vector<16x8xf32> to vector<16x8xbf16>
    %c0_12 = arith.constant 0 : index
    %c0_13 = arith.constant 0 : index
    %17 = vector.load %arg6[%c0_12, %c0_13] : memref<8x128xbf16, #tpu.memory_space<vmem>>, vector<8x128xbf16>
    %cst_14 = arith.constant dense<0.000000e+00> : vector<16x128xf32>
    %18 = tpu.matmul %16, %17, %cst_14 {dimension_numbers = #tpu.dot_dimension_numbers<[1], [0], [0], [1], [0, 0, 1, 1], [], []>} : vector<16x8xbf16>, vector<8x128xbf16>, vector<16x128xf32> -> vector<16x128xf32>
    %c0_15 = arith.constant 0 : index
    %c0_16 = arith.constant 0 : index
    %19 = vector.load %arg7[%c0_15, %c0_16] : memref<1x128xf32, #tpu.memory_space<vmem>>, vector<1x128xf32>
    %20 = vector.broadcast %19 : vector<1x128xf32> to vector<16x128xf32>
    %21 = arith.addf %18, %20 : vector<16x128xf32>
    %c0_17 = arith.constant 0 : index
    %c0_18 = arith.constant 0 : index
    %22 = vector.load %arg8[%c0_17, %c0_18] : memref<16x128xf32, #tpu.memory_space<vmem>>, vector<16x128xf32>
    tpu.vector_store %arg8[%c0_17, %c0_18], %21 {strides = array<i32>} : memref<16x128xf32, #tpu.memory_space<vmem>>, vector<16x128xf32>,
    return
  }
  func.func @transform_0(%arg0: i32) -> (i32, i32) {
    %c0_i32 = arith.constant 0 : i32
    %c0_i32_0 = arith.constant 0 : i32
    return %arg0, %c0_i32 : i32, i32
  }
  func.func @transform_1(%arg0: i32) -> (i32, i32) {
    %c0_i32 = arith.constant 0 : i32
    %c0_i32_0 = arith.constant 0 : i32
    %c0_i32_1 = arith.constant 0 : i32
    return %c0_i32, %c0_i32_0 : i32, i32
  }
  func.func @transform_2(%arg0: i32) -> (i32, i32) {
    %c0_i32 = arith.constant 0 : i32
    %c0_i32_0 = arith.constant 0 : i32
    %c0_i32_1 = arith.constant 0 : i32
    return %c0_i32, %c0_i32_0 : i32, i32
  }
  func.func @transform_3(%arg0: i32) -> (i32, i32) {
    %c0_i32 = arith.constant 0 : i32
    %c0_i32_0 = arith.constant 0 : i32
    %c0_i32_1 = arith.constant 0 : i32
    return %c0_i32, %c0_i32_0 : i32, i32
  }
  func.func @transform_4(%arg0: i32) -> (i32, i32) {
    %c0_i32 = arith.constant 0 : i32
    %c0_i32_0 = arith.constant 0 : i32
    %c0_i32_1 = arith.constant 0 : i32
    return %c0_i32, %c0_i32_0 : i32, i32
  }
  func.func @transform_5(%arg0: i32) -> (i32, i32) {
    %c0_i32 = arith.constant 0 : i32
    %c0_i32_0 = arith.constant 0 : i32
    %c0_i32_1 = arith.constant 0 : i32
    return %c0_i32, %c0_i32_0 : i32, i32
  }
  func.func @transform_6(%arg0: i32) -> (i32, i32) {
    %c0_i32 = arith.constant 0 : i32
    %c0_i32_0 = arith.constant 0 : i32
    %c0_i32_1 = arith.constant 0 : i32
    return %c0_i32, %c0_i32_0 : i32, i32
  }
  func.func @transform_7(%arg0: i32) -> (i32, i32) {
    %c0_i32 = arith.constant 0 : i32
    %c0_i32_0 = arith.constant 0 : i32
    return %arg0, %c0_i32 : i32, i32
  }
}

</mosaic_0001>

<bundles_post_ra>
// kernel: tpu_custom_call.1
= control target key start
LH: loop header
LB: loop body
LE: loop exit
PB: predicated region body
PF: predicated region fallthrough
CT: control target
= control target key end

     0   :  { %v314_v1 = vmov 0.0   ;;  %vm315_vm0 = vmmov 0   ;;  %s398_s0 = inlined_call_operand.vmem [shape: bf16[16,32], index: 0, kind: input, shape index: {}]   ;;  %s399_s1 = inlined_call_operand.vmem [shape: bf16[32,16], index: 1, kind: input, shape index: {}]   ;;  %s400_s2 = inlined_call_operand.vmem [shape: f32[1,16], index: 2, kind: input, shape index: {}]   ;;  %s401_s3 = inlined_call_operand.vmem [shape: bf16[16,8], index: 3, kind: input, shape index: {}]   ;;  %s402_s4 = inlined_call_operand.vmem [shape: f32[1,8], index: 4, kind: input, shape index: {}]   ;;  %s403_s5 = inlined_call_operand.vmem [shape: bf16[8,128], index: 5, kind: input, shape index: {}]   ;;  %s404_s6 = inlined_call_operand.vmem [shape: f32[1,128], index: 6, kind: input, shape index: {}]   ;;  %s405_s7 = inlined_call_operand.hbm [shape: f32[16,128], index: 7, kind: output, shape index: {}]  }
   0x1   :  { %v286_v0 = vld [vmem:[%s399_s1] sm:$0xff]   ;;  %261 = vmatprep.subr.bf16.mxu0 %v314_v1  ;;  %269 = vmatprep.subr.bf16.mxu1 %v314_v1  ;;  %v287_v2 = vld [vmem:[%s399_s1 + $0x8] sm:$0xff]  }
   0x2   :  { %262 = vmatpush3.bf16.msra.mxu0 %v286_v0  ;;  %265 = vmatprep.mubr.msk.bf16.mxu0 %vm315_vm0, %v314_v1 }
   0x3   :  { %263 = vmatprep.subr.bf16.mxu0 %v314_v1  ;;  %271 = vmatprep.mubr.msk.bf16.mxu1 %vm315_vm0, %v314_v1 }
   0x4   :  { %12 = vsyncpa [#allocation3], 0  ;;  %v288_v3 = vld [vmem:[%s398_s0] sm:$0xff]   ;;  %vm58_vm1 = vcmask 261120   ;;  %vm121_vm2 = vcmask 130048   ;;  %vm181_vm3 = vcmask 1043456  }
   0x5   :  { %v289_v4 = vld [vmem:[%s401_s3] sm:$0xff]   ;;  %vm177_vm4 = vcmask 64512   ;;  %s316_s12 = smov [#allocation2]  }
   0x6   :  { %264 = vmatpush3.bf16.msra.mxu0 %v287_v2  ;;  %270 = vmatpush3.bf16.msra.mxu1 %v289_v4  ;;  %v244_v5 = vld [vmem:[%s400_s2] ss:$0 sm:$0xff]  ;;  %s233_s13 = sshll.u32 %s316_s12, 4  ;;  %s234_s13 = int_to_ptr.vmem [resolvable:$true] %s233_s13 }
   0x7   :  { %275 = vmatprep.subr.bf16.mxu1 %v314_v1  ;;  %v169_v15 = vld [vmem:[%s403_s5] sm:$0xf]  ;;  %p295_p1 = scmp.lt.s32.totalorder %s234_s13, %s234_s13 }
   0x8   :  { %v183_v16 = vsel %vm181_vm3, %v169_v15, 0  ;;  %v249_v17 = vld [vmem:[%s402_s4] ss:$0 sm:$0xff]  ;;  %s290_s4 = scalar_lea.vmem %s234_s13, 256 }
   0x9   :  { %266 = vmatmul.mubr.msk.bf16.vlgmr.msra.gmra.mrb[0].mxu0 %vm58_vm1, %v288_v3  ;;  %v252_v27 = vld [vmem:[%s404_s6] ss:$0 sm:$0xff]  ;;  %p291_p0 = scmp.ne.s32.totalorder %s234_s13, %s290_s4  ;;  %p296_p2 = scmp.lt.s32.totalorder %s290_s4, %s290_s4 }
   0xb   :  { %p297_p3 = por %p296_p2, %p295_p1 }
   0xd   :  { %p298_p4 = pnand %p297_p3, %p291_p0 }
  0xdc   :  { %v96_v6 = vpop.f32.mrb[0].mxu0 }
  0xdd   :  { %v97_v7 = vadd.f32 %v244_v5, %v96_v6  ;;  %v267_v8 = vpop.f32.mrb[1].mxu0 }
  0xde   :  { %v99_v9 = vpop.f32.mrb[2].mxu0 }
  0xdf   :  { %v100_v10 = vadd.f32 %v244_v5, %v99_v9  ;;  %v268_v11 = vpop.f32.mrb[3].mxu0  ;;  %v103_v12 = vmax.f32 %v97_v7, 0.0 }
  0xe1   :  { %v104_v13 = vmax.f32 %v100_v10, 0.0 }
  0xe3   :  { %v105_v14 = vpack.c.bf16 %v104_v13, %v103_v12 }
  0xe5   :  { %272 = vmatmul.mubr.msk.bf16.vlgmr.msra.gmra.mrb[0].mxu1 %vm121_vm2, %v105_v14 }
  0xe6   :  { %277 = vmatprep.mubr.msk.bf16.mxu1 %vm315_vm0, %v314_v1  ;;  %276 = vmatpush3.bf16.msra.mxu1 %v183_v16 }
 0x1b8   :  { %v159_v18 = vpop.f32.mrb[0].mxu1 }
 0x1b9   :  { %v160_v19 = vadd.f32 %v249_v17, %v159_v18  ;;  %v273_v20 = vpop.f32.mrb[1].mxu1 }
 0x1ba   :  { %v162_v21 = vpop.f32.mrb[2].mxu1 }
 0x1bb   :  { %v163_v22 = vadd.f32 %v249_v17, %v162_v21  ;;  %v274_v23 = vpop.f32.mrb[3].mxu1  ;;  %v166_v24 = vmax.f32 %v160_v19, 0.0 }
 0x1bd   :  { %v167_v25 = vmax.f32 %v163_v22, 0.0 }
 0x1bf   :  { %v168_v26 = vpack.c.bf16 %v167_v25, %v166_v24 }
 0x1c1   :  { %278 = vmatmul.mubr.msk.bf16.vlgmr.msra.gmra.mrb[4].mxu1 %vm177_vm4, %v168_v26 }
 0x294   :  { %v219_v28 = vpop.f32.mrb[4].mxu1 }
 0x295   :  { %v220_v29 = vadd.f32 %v252_v27, %v219_v28  ;;  %v279_v30 = vpop.f32.mrb[5].mxu1 }
 0x296   :  { %v222_v31 = vpop.f32.mrb[6].mxu1 }
 0x297   :  { %226 = vst [vmem:[#allocation2] sm:$0xff] %v220_v29  ;;  %v223_v32 = vadd.f32 %v252_v27, %v222_v31  ;;  %v280_v33 = vpop.f32.mrb[7].mxu1 }
 0x299   :  { %227 = vst [vmem:[#allocation2 + $0x8] sm:$0xff] %v223_v32 }
 0x29a   :  { %301 = shalt.err (!%p298_p4)
}
 0x29b   :  { %s302_s15 = scalar_lea.hbm %s405_s7, 256 }
 0x29c   :  { %p303_p5 = scmp.ne.s32.totalorder %s405_s7, %s302_s15  ;;  %p306_p6 = scmp.lt.u32.totalorder %s302_s15, %s405_s7 }
 0x29e   :  { %p308_p7 = pnand %p306_p6, %p303_p5 }
 0x2a0   :  { %311 = shalt.err (!%p308_p7)
}
 0x2a1   :  { %s317_s20 = smov 128   ;;  %s318_s21 = smov 8  }
 0x2a2   :  { %239 = dma.vmem_to_hbm [thread:$0]  %s234_s13, 256, %s405_s7, [#allocation3], %s317_s20, %s317_s20, %s318_s21  }
 0x2a3   :  { %312 = dma.done.wait [#allocation3], 256  }
 0x2a4   :  { %313 = vsyncadd [#allocation3], 4294967040 }
 0x2a5   :  { %243 = vsyncpa [#allocation3], 1 }

</bundles_post_ra>
